<compile_context>
chip_gen: v6e
topology: v6e:2x2x1
jax: 0.10.0
libtpu: 0.0.40
codegen_flags: <defaults>
</compile_context>

<pallas_src>
import functools
import math

import jax
import jax.numpy as jnp
from jax.experimental import pallas as pl
from jax.experimental.pallas import tpu as pltpu


def _drop_path_kernel(keep_ref, x_ref, o_ref, *, scale, compute_dtype):
    """keep_ref: (B,) int32 in SMEM (scalar prefetch); 1 = keep, 0 = drop."""
    b = pl.program_id(0)
    keep = keep_ref[b] != 0
    factor = jnp.where(
        keep,
        jnp.asarray(scale, compute_dtype),
        jnp.asarray(0.0, compute_dtype),
    )
    o_ref[...] = (x_ref[...].astype(compute_dtype) * factor).astype(o_ref.dtype)


def _vmem_capacity_bytes(default=64 << 20):
    """Trace-time VMEM capacity query with a conservative fallback."""
    try:
        info = pltpu.get_tpu_info()
        for name in ("vmem_capacity_bytes", "vmem_bytes", "vmem_size_bytes"):
            v = getattr(info, name, None)
            if v:
                return int(v)
    except Exception:
        pass
    return default


def _choose_lanes(n_pad, max_lanes=8192):
    """Largest multiple of 128 (<= max_lanes) dividing n_pad (n_pad % 128 == 0)."""
    best = 128
    m = 128
    while m <= max_lanes:
        if n_pad % m == 0:
            best = m
        m += 128
    return best


def _choose_row_tile(rows, lanes, itemsize, target_bytes, batch, min_total_steps=8):
    """Row tile bounded by target_bytes, multiple of 8 (or full extent), with
    enough row-steps that the total grid has ~min_total_steps iterations."""
    bytes_per_row = max(1, lanes * itemsize)
    target_rows = max(1, target_bytes // bytes_per_row)
    want_row_steps = max(1, -(-min_total_steps // max(batch, 1)))
    row_tile = min(rows, target_rows)
    if want_row_steps > 1:
        row_tile = min(row_tile, -(-rows // want_row_steps))
    if row_tile >= rows:
        return rows
    # Partial-tile path: must be a multiple of 8 to satisfy the (8, 128) rule
    # (pl.cdiv grid handles the trailing partial block).
    row_tile = max(8, (row_tile // 8) * 8)
    if row_tile >= rows:
        return rows
    return row_tile


def drop_path_pallas(x, *, drop_prob=0.0, training=False, scale_by_keep=True, key=None):
    """Pallas equivalent of timm-style drop_path on NCHW (or any N-D) input."""
    if drop_prob == 0.0 or not training:
        return x
    if key is None:
        key = jax.random.PRNGKey(0)

    keep_prob = 1.0 - drop_prob
    B = x.shape[0]
    N = math.prod(x.shape[1:])
    itemsize = jnp.dtype(x.dtype).itemsize

    # Per-sample keep decision, computed once in plain JAX (hoisted out of the
    # kernel); passed to the kernel as an SMEM scalar-prefetch array.
    keep = jax.random.bernoulli(key, p=keep_prob, shape=(B,)).astype(jnp.int32)
    scale = (1.0 / keep_prob) if (scale_by_keep and keep_prob > 0.0) else 1.0

    # Per-generation budgets: ~6 MiB blocks on 64 MiB-VMEM chips (v7x),
    # ~4 MiB on 128 MiB-VMEM chips (v5e/v6e); raise scoped VMEM explicitly so
    # the 4x double-buffered blocks always fit (v5e's default is only 16 MiB).
    vmem_cap = _vmem_capacity_bytes()
    target_bytes = (6 << 20) if vmem_cap <= (64 << 20) else (4 << 20)
    vmem_limit = int(min(48 << 20, max(vmem_cap - (16 << 20), 24 << 20)))

    # Lane-dense layout: pad N to a multiple of 128 if needed, then factor into
    # (rows, lanes) with lanes a multiple of 128 -> unmasked full-lane stores.
    x2 = x.reshape(B, N)
    n_pad = -(-N // 128) * 128
    if n_pad != N:
        x2 = jnp.pad(x2, ((0, 0), (0, n_pad - N)))
    lanes = _choose_lanes(n_pad)
    rows = n_pad // lanes
    x3 = x2.reshape(B, rows, lanes)

    row_tile = _choose_row_tile(rows, lanes, itemsize, target_bytes, B)
    grid = (B, pl.cdiv(rows, row_tile))

    if x.dtype in (jnp.float32, jnp.bfloat16):
        compute_dtype = x.dtype          # native VPU multiply (no f32 round-trip)
    else:
        compute_dtype = jnp.float32

    kernel = functools.partial(
        _drop_path_kernel, scale=float(scale), compute_dtype=compute_dtype
    )

    # Input index_map is data-dependent on the keep mask: dropped samples keep
    # pointing at block (b, 0, 0), so the pipeline de-dups the repeated fetch
    # and we skip ~drop_prob of the HBM read traffic. The kernel multiplies
    # whatever was fetched by 0 for dropped samples, so this stays correct.
    out = pl.pallas_call(
        kernel,
        out_shape=jax.ShapeDtypeStruct((B, rows, lanes), x.dtype),
        grid_spec=pltpu.PrefetchScalarGridSpec(
            num_scalar_prefetch=1,
            grid=grid,
            in_specs=[
                pl.BlockSpec(
                    (1, row_tile, lanes),
                    lambda b, r, keep_ref: (b, r * keep_ref[b], 0),
                ),
            ],
            out_specs=pl.BlockSpec(
                (1, row_tile, lanes), lambda b, r, keep_ref: (b, r, 0)
            ),
        ),
        compiler_params=pltpu.CompilerParams(
            dimension_semantics=("parallel", "parallel"),
            vmem_limit_bytes=vmem_limit,
        ),
        # TODO(synk): optionally add input_output_aliases={1: 0} when callers
        # donate x (saves a full-activation HBM allocation, not bandwidth).
    )(keep, x3)

    out = out.reshape(B, n_pad)
    if n_pad != N:
        out = out[:, :N]
    return out.reshape(x.shape)


if __name__ == "__main__":
    root_key = jax.random.PRNGKey(0)
    xkey, mkey = jax.random.split(root_key)

    B, C, H, W = 2, 4, 16, 16
    x = jax.random.normal(xkey, (B, C, H, W), dtype=jnp.float32)

    drop_prob = 0.25
    keep_prob = 1.0 - drop_prob

    # Training mode: per-sample mask applied in the kernel.
    y_train = drop_path_pallas(
        x, drop_prob=drop_prob, training=True, scale_by_keep=True, key=mkey
    )
    y_train = jax.block_until_ready(y_train)

    # Eval mode / drop_prob == 0: identity (same semantics as the PyTorch module).
    y_eval = drop_path_pallas(x, drop_prob=drop_prob, training=False)
    y_eval = jax.block_until_ready(y_eval)

    # --- semantic checks ---
    ok = True
    # Eval path must be exactly x.
    ok &= bool(jnp.array_equal(y_eval, x))

    # Reference: recompute the same per-sample mask in plain JAX.
    keep_mask = jax.random.bernoulli(mkey, p=keep_prob, shape=(B,)).astype(jnp.float32)
    y_ref = x * (keep_mask / keep_prob)[:, None, None, None]
    ok &= bool(jnp.allclose(y_train, y_ref, rtol=1e-6, atol=1e-6))

    # Structural check: each training-mode sample is all-zero or x / keep_prob.
    for b in range(B):
        yb = y_train[b]
        is_dropped = bool(jnp.all(yb == 0.0))
        is_kept = bool(jnp.allclose(yb, x[b] / keep_prob, rtol=1e-5, atol=1e-5))
        ok &= (is_dropped or is_kept)

    # Non-aligned shape exercise of the padding / partial-tile path.
    x_odd = jax.random.normal(xkey, (2, 3, 7, 7), dtype=jnp.float32)
    y_odd = jax.block_until_ready(
        drop_path_pallas(x_odd, drop_prob=drop_prob, training=True, key=mkey)
    )
    y_odd_ref = x_odd * (keep_mask / keep_prob)[:, None, None, None]
    ok &= bool(jnp.allclose(y_odd, y_odd_ref, rtol=1e-6, atol=1e-6))

    print("KERNEL_OK" if ok else "KERNEL_MISMATCH")
</pallas_src>

<mosaic_0001>
module attributes {stable_mosaic.version = 11 : i64} {
  func.func @_drop_path_kernel(%arg0: i32, %arg1: i32, %arg2: memref<2xi32, #tpu.memory_space<smem>>, %arg3: memref<1x1x1024xf32, #tpu.memory_space<vmem>>, %arg4: memref<1x1x1024xf32, #tpu.memory_space<vmem>>) attributes {dimension_semantics = [#tpu.dimension_semantics<parallel>, #tpu.dimension_semantics<parallel>], iteration_bounds = array<i64: 2, 1>, scalar_prefetch = 1 : i64, scratch_operands = 0 : i64, tpu.core_type = #tpu.core_type<tc>, window_params = [{transform_indices = @transform_0, window_bounds = array<i64: 1, 1, 1024>}, {transform_indices = @transform_1, window_bounds = array<i64: 1, 1, 1024>}]} {
    %0 = arith.index_cast %arg0 : i32 to index
    %1 = memref.load %arg2[%0] : memref<2xi32, #tpu.memory_space<smem>>
    %c0_i32 = arith.constant 0 : i32
    %2 = arith.cmpi ne, %1, %c0_i32 : i32
    %cst = arith.constant 1.33333337 : f32
    %cst_0 = arith.constant 0.000000e+00 : f32
    %3 = arith.select %2, %cst, %cst_0 : f32
    %c0 = arith.constant 0 : index
    %c0_1 = arith.constant 0 : index
    %c0_2 = arith.constant 0 : index
    %4 = vector.load %arg3[%c0, %c0_1, %c0_2] : memref<1x1x1024xf32, #tpu.memory_space<vmem>>, vector<1x1x1024xf32>
    %5 = vector.broadcast %3 : f32 to vector<1x1x1024xf32>
    %6 = arith.mulf %4, %5 : vector<1x1x1024xf32>
    %c0_3 = arith.constant 0 : index
    %c0_4 = arith.constant 0 : index
    %c0_5 = arith.constant 0 : index
    %7 = vector.load %arg4[%c0_3, %c0_4, %c0_5] : memref<1x1x1024xf32, #tpu.memory_space<vmem>>, vector<1x1x1024xf32>
    tpu.vector_store %arg4[%c0_3, %c0_4, %c0_5], %6 {strides = array<i32>} : memref<1x1x1024xf32, #tpu.memory_space<vmem>>, vector<1x1x1024xf32>,
    return
  }
  func.func @transform_0(%arg0: i32, %arg1: i32, %arg2: memref<2xi32, #tpu.memory_space<smem>>) -> (i32, i32, i32) {
    %0 = arith.index_cast %arg0 : i32 to index
    %1 = memref.load %arg2[%0] : memref<2xi32, #tpu.memory_space<smem>>
    %2 = arith.muli %arg1, %1 : i32
    %c0_i32 = arith.constant 0 : i32
    %c0_i32_0 = arith.constant 0 : i32
    return %arg0, %2, %c0_i32 : i32, i32, i32
  }
  func.func @transform_1(%arg0: i32, %arg1: i32, %arg2: memref<2xi32, #tpu.memory_space<smem>>) -> (i32, i32, i32) {
    %c0_i32 = arith.constant 0 : i32
    %c0_i32_0 = arith.constant 0 : i32
    return %arg0, %arg1, %c0_i32 : i32, i32, i32
  }
}

</mosaic_0001>

<bundles_post_ra>
// kernel: tpu_custom_call.1
= control target key start
LH: loop header
LB: loop body
LE: loop exit
PB: predicated region body
PF: predicated region fallthrough
CT: control target
= control target key end

     0   :  { %s472_s9 = smov [#allocation3]   ;;  %s628_s0 = inlined_call_operand.hbm [shape: s32[2], index: 0, kind: input, shape index: {}]   ;;  %s629_s1 = inlined_call_operand.hbm [shape: f32[2,1,1024], index: 1, kind: input, shape index: {}]   ;;  %s630_s2 = inlined_call_operand.hbm [shape: f32[2,1,1024], index: 2, kind: output, shape index: {}]  }
   0x1   :  { %8 = dma.hbm_to_smem %s628_s0, 16, %s472_s9, [#allocation2] }
   0x2   :  { %438 = dma.done.wait [#allocation2], 16 }
   0x3   :  { %439 = vsyncadd [#allocation2], 4294967280 }
   0x4   :  { %10 = sfence }
   0x5   :  { %11 = vsyncpa [#allocation5], 0 }
   0x6   :  { %13 = vsyncpa [#allocation5 + $0x1], 0 }
   0x7   :  { %14 = vsyncpa [#allocation6], 0 }
   0x8   :  { %16 = vsyncpa [#allocation6 + $0x1], 0  ;;  %s493_s12 = smov 0   ;;  %s495_s13 = smov 0  }
   0x9   :  { %s497_s14 = smov 0   ;;  %s499_s15 = smov 0  }
   0xa   :  { %s501_s16 = smov 0   ;;  %s503_s17 = smov 0  }
   0xb LB: > { %s272_s0 = sadd.s32 4294967295, %s470_s17   ;;  %s273_s18 = sadd.s32 4294967294, %s470_s17   ;;  %s470_s17 = sphi %s503_s17, %s22_s17   ;;  %s466_s16 = sphi %s501_s16, %s642_s16   ;;  %s462_s15 = sphi %s499_s15, %s641_s15   ;;  %s458_s14 = sphi %s497_s14, %s640_s14   ;;  %s454_s13 = sphi %s495_s13, %s639_s13   ;;  %s450_s12 = sphi %s493_s12, %s638_s12  }
   0xc   : > { %s34_s19 = sadd.s32 1, %s466_s16  ;;  %s47_s20 = sadd.s32 1, %s458_s14 }
   0xd   : > { %p36_p0 = scmp.ge.s32.totalorder %s34_s19, 2  ;;  %p54_p1 = scmp.ne.s32.totalorder %s458_s14, %s454_s13 }
   0xe   : > { %p55_p2 = scmp.eq.s32.totalorder %s470_s17, 0  ;;  %p60_p3 = scmp.ne.s32.totalorder %s454_s13, %s450_s12 }
   0xf   : > { %s644_s19 = smov (%p36_p0, %s34_s19), 0  ;;  %p61_p5 = scmp.eq.s32.totalorder %s272_s0, 0 }
  0x10   : > { %p534_p4 = por %p55_p2, %p54_p1  ;;  %s42_s22 = ssub.s32 %s466_s16, %s644_s19 }
  0x11   : > { %p86_p6 = scmp.eq.s32.totalorder %s272_s0, 1  ;;  %p45_p7 = scmp.eq.s32.totalorder %s42_s22, 0 }
  0x12   : > { %p540_p8 = por %p61_p5, %p60_p3  ;;  %p92_p10 = scmp.eq.s32.totalorder %s273_s18, 1 }
  0x13   : > { %p544_p9 = por %p86_p6, %p54_p1  ;;  %p301_p13 = scmp.lt.s32.totalorder %s470_s17, 2 }
  0x14   : > { %s549_s25 = scalar_select %p45_p7, %s458_s14, %s47_s20  }
  0x15   : > { %p551_p11 = por %p92_p10, %p60_p3  ;;  %s112_s27 = sand.u32 1, %s458_s14  }
  0x16   : > { %s276_s28 = sshll.u32 %s112_s27, 3  ;;  %s287_s29 = sshll.u32 %s466_s16, 7 }
  0x17   : > { %s634_s26 = scalar_select %p551_p11, 1, 0 }
  0x18   : > { %s126_s4 = scalar_lea.hbm %s629_s1, %s287_s29  ;;  %s116_s5 = scalar_lea.vmem [#allocation4], %s276_s28 }
  0x19   : > { %s128_s6 = sshll.u32 %s116_s5, 4  ;;  %p564_p0 = pnand %p301_p13, %p534_p4  ;;  %s129_s6 = int_to_ptr.vmem [resolvable:$true] %s128_s6 }
  0x1a   : > { %p279_p1 = scmp.ge.s32.totalorder %s470_s17, 1  ;;  %p133_p2 = scmp.lt.s32.totalorder %s470_s17, 3 }
  0x1b   : > { %s113_s8 = scalar_lea.sflag [#allocation5], %s112_s27  ;;  %p362_p3 = pneg %p564_p0 }
  0x1c   : > { %s373_s9 = scalar_lea.vmem %s129_s6, 128  ;;  %s473_s10 = smov [#allocation4]  }
  0x1d   : > { %p374_p5 = scmp.ne.s32.totalorder %s129_s6, %s373_s9  ;;  %s378_s11 = sshll.u32 %s473_s10, 4  ;;  %s379_s11 = int_to_ptr.vmem [resolvable:$false] %s378_s11 }
  0x1e   : > { %s380_s0 = scalar_lea.vmem %s379_s11, 256  ;;  %p381_p10 = scmp.lt.s32.totalorder %s129_s6, %s379_s11 }
  0x1f   : > { %p376_p6 = pnand %p374_p5, %p362_p3  ;;  %p382_p12 = scmp.lt.s32.totalorder %s380_s0, %s373_s9 }
  0x21   : > { %p377_p7 = pneg %p376_p6  ;;  %p383_p4 = por %p382_p12, %p381_p10 }
  0x23   : > { %p384_p13 = pnand %p383_p4, %p377_p7 }
  0x25   : > { %387 = shalt.err (!%p384_p13)
}
  0x26   : > { %296 = dma.hbm_to_vmem [thread:$0]  (!%p564_p0), %s126_s4, 128, %s129_s6, %s113_s8  }
  0x27   : > { %p134_p11 = pnand %p279_p1, %p133_p2 }
  0x28   : > { %s579_s18 = sand.u32 (!%p134_p11), 1, %s454_s13  }
  0x29   : > { %137 = sbr.rel (%p134_p11) target bundleno = 73 (0x49), region = 24  ;;  %s280_s20 = sshll.u32 (!%p134_p11), %s579_s18, 3 }
  0x2a   : > { %s140_s21 = scalar_lea.sflag (!%p134_p11), [#allocation5], %s579_s18  ;;  %s143_s22 = scalar_lea.vmem (!%p134_p11), [#allocation4], %s280_s20 }
  0x2e   : > { %441 = dma.done.wait (%p540_p8), %s140_s21, 128  }
  0x2f   : > { %443 = vsyncadd (%p540_p8), %s140_s21, 4294967168  ;;  %s164_s27 = sld [smem:[#allocation3 + %s462_s15]]  ;;  %s161_s28 = scalar_lea.vmem [#allocation7], %s280_s20  ;;  %v167_v0 = vld [vmem:[%s143_s22] sm:$0xff] }
  0x30   : > { %s188_s29 = sshll.u32 %s161_s28, 4  ;;  %s288_s30 = sshll.u32 %s462_s15, 7  ;;  %s189_s29 = int_to_ptr.vmem [resolvable:$true] %s188_s29 }
  0x31   : > { %s186_s6 = scalar_lea.hbm %s630_s2, %s288_s30  ;;  %s172_s23 = scalar_lea.sflag [#allocation6], %s579_s18 }
  0x32   : > { %s388_s7 = scalar_lea.vmem %s189_s29, 128  ;;  %s474_s8 = smov [#allocation7]  }
  0x33   : > { %p389_p8 = scmp.ne.s32.totalorder %s189_s29, %s388_s7  ;;  %s392_s9 = sshll.u32 %s474_s8, 4  ;;  %s393_s9 = int_to_ptr.vmem [resolvable:$false] %s392_s9 }
  0x34   : > { %s394_s15 = scalar_lea.vmem %s393_s9, 256  ;;  %p395_p1 = scmp.lt.s32.totalorder %s189_s29, %s393_s9 }
  0x35   : > { %p165_p11 = scmp.ne.s32.totalorder %s164_s27, 0  ;;  %p390_p12 = pnand %p389_p8, %p544_p9 }
  0x36   : > { %p396_p2 = scmp.lt.s32.totalorder %s394_s15, %s388_s7 }
  0x37   : > { %s166_s3 = scalar_select %p165_p11, 1.3333334, 0.0 }
  0x38   : > { %p391_p0 = pneg %p390_p12  ;;  %p397_p3 = por %p396_p2, %p395_p1 }
  0x39   : > { %v168_v1 = vstv %s166_s3 }
  0x3a   : > { %v169_v2 = vmul.f32 %v168_v1, %v167_v0  ;;  %p398_p5 = pnand %p397_p3, %p391_p0 }
  0x3c   : > { %170 = vst [vmem:[%s161_s28] sm:$0xff] %v169_v2 }
  0x3d   : > { %401 = shalt.err (!%p398_p5)
}
  0x3e   : > { %s402_s10 = scalar_lea.hbm %s186_s6, 128  ;;  %s406_s18 = scalar_lea.hbm %s630_s2, 256 }
  0x3f   : > { %p403_p6 = scmp.ne.s32.totalorder %s186_s6, %s402_s10  ;;  %p407_p4 = scmp.lt.s32.totalorder %s186_s6, %s630_s2 }
  0x40   : > { %p408_p13 = scmp.lt.s32.totalorder %s406_s18, %s402_s10 }
  0x41   : > { %p404_p7 = pnand %p403_p6, %p544_p9 }
  0x42   : > { %p409_p11 = por %p408_p13, %p407_p4 }
  0x43   : > { %p405_p10 = pneg %p404_p7 }
  0x45   : > { %p410_p8 = pnand %p409_p11, %p405_p10 }
  0x47   : > { %413 = shalt.err (!%p410_p8)
}
  0x48   : > { %291 = dma.vmem_to_hbm [thread:$0]  (%p544_p9), %s189_s29, 128, %s186_s6, %s172_s23  }
  0x49 PF: > { %s200_s22 = sand.u32 1, %s450_s12   ;;  %p636_p12 = scmp.ne.s32.totalorder %s634_s26, 0 }
  0x4a   : > { %p637_p0 = scmp.ge.s32.totalorder %s470_s17, 2  ;;  %s201_s27 = scalar_lea.sflag [#allocation6], %s200_s22 }
  0x4c   : > { %p298_p1 = pnand %p637_p0, %p636_p12 }
  0x4e   : > { %p299_p2 = pneg %p298_p1 }
  0x50   : > { %445 = dma.done.wait (%p299_p2), %s201_s27, 128  }
  0x51   : > { %447 = vsyncadd (%p299_p2), %s201_s27, 4294967168  ;;  %s22_s17 = sadd.s32 1, %s470_s17   ;;  %s638_s12 = smov %s454_s13 }
  0x52   : > { %p19_p3 = scmp.ge.s32.totalorder %s22_s17, 4   ;;  %s639_s13 = smov %s458_s14 }
  0x53   : > { %s640_s14 = smov %s549_s25  ;;  %s641_s15 = smov %s466_s16 }
  0x54   : > { %s642_s16 = smov %s644_s19  ;;  %21 = sbr.rel (!%p19_p3) target bundleno = 11 (0xb), region = 69 }
  0x59   :  { %206 = vsyncpa [#allocation5], 1 }
  0x5a   :  { %208 = vsyncpa [#allocation5 + $0x1], 1 }
  0x5b   :  { %209 = vsyncpa [#allocation6], 1 }
  0x5c   :  { %211 = vsyncpa [#allocation6 + $0x1], 1 }

</bundles_post_ra>
